<compile_context>
chip_gen: v6e
topology: v6e:2x2x1
jax: 0.10.0
libtpu: 0.0.40
codegen_flags: <defaults>
</compile_context>

<pallas_src>
import jax
import jax.numpy as jnp
from jax.experimental import pallas as pl
from jax.experimental.pallas import tpu as pltpu


def _sublane_multiple(dtype):
    # 8 rows for 4-byte dtypes, 16 for bf16/fp16, 32 for int8/fp8.
    return max(8, 32 // jnp.dtype(dtype).itemsize)


def _vmem_budget_and_limit():
    """Generation-aware (budget for tiling, explicit scoped-VMEM limit)."""
    try:
        cap = int(pltpu.get_tpu_info().vmem_capacity_bytes)
    except Exception:
        cap = 64 << 20  # conservative fallback == v7x per-TC VMEM
    budget = min(cap // 2, 48 << 20)          # working-set target for tiles
    limit = min(int(cap * 0.85), budget * 2)  # explicit scoped-VMEM limit
    return budget, limit


def _pick_layout(B, S, H):
    """Pick a lane-dense 2D view (rows, lanes) of the contiguous (B,S,H) data."""
    n = B * S * H
    if H >= 128 and H % 128 == 0:
        return B * S, H
    if n % 128 == 0:
        return n // 128, 128
    # Fallback: correct but with masked lane stores when H < 128.
    return B * S, H


def _pick_row_tile(rows, lanes, nl, itemsize, sub, budget):
    """Largest sublane-aligned row tile fitting the VMEM budget.

    Per resident row:
      2 (double buffer) * nl input rows + 2 output rows (native dtype)
      + 2 f32 rows of headroom (accumulator + one cast temporary).
    """
    per_row = (2 * nl + 2) * lanes * itemsize + 2 * 4 * lanes
    max_rows = max(sub, budget // max(per_row, 1))
    if rows <= max_rows:
        return rows  # full-extent block: always legal regardless of alignment
    return max(sub, (max_rows // sub) * sub)


def weighted_layer_pooling(layer_embeddings, layer_weights):
    """Weighted mean over layers.

    layer_embeddings: sequence of NL arrays, each (B, S, H) (already the
                      layers >= layer_start — no stacked copy is made).
    layer_weights:    (NL,) float weights.
    Returns (B, S, H) = sum_l w_l * x_l / sum_l w_l.
    """
    layer_embeddings = list(layer_embeddings)
    nl = len(layer_embeddings)
    B, S, H = layer_embeddings[0].shape
    dtype = layer_embeddings[0].dtype
    itemsize = jnp.dtype(dtype).itemsize

    # Pre-normalize: kernel then only multiply-accumulates (no in-kernel divide).
    # TODO(synk): zero-sum weights give NaN/Inf, same hazard as the PyTorch original.
    w = layer_weights.astype(jnp.float32)
    w_norm = w / jnp.sum(w)

    rows, lanes = _pick_layout(B, S, H)
    sub = _sublane_multiple(dtype)
    budget, vmem_limit = _vmem_budget_and_limit()
    ts = _pick_row_tile(rows, lanes, nl, itemsize, sub, budget)
    grid = (pl.cdiv(rows, ts),)

    # Free reshape (contiguous row-major bitcast) to a lane-dense 2D slab.
    flat_layers = [x.reshape(rows, lanes) for x in layer_embeddings]

    def kernel(w_ref, *refs):
        # w_ref : SMEM (nl,) normalized layer weights (scalar prefetch)
        # refs  : nl input refs of shape (ts, lanes) followed by one output ref
        x_refs = refs[:nl]
        o_ref = refs[nl]
        acc = x_refs[0][...].astype(jnp.float32) * w_ref[0]
        for l in range(1, nl):
            acc = acc + x_refs[l][...].astype(jnp.float32) * w_ref[l]
        o_ref[...] = acc.astype(o_ref.dtype)

    # index_maps receive the scalar-prefetch ref as a trailing positional arg.
    block = pl.BlockSpec((ts, lanes), lambda i, w: (i, 0))

    out2d = pl.pallas_call(
        kernel,
        out_shape=jax.ShapeDtypeStruct((rows, lanes), dtype),
        grid_spec=pltpu.PrefetchScalarGridSpec(
            num_scalar_prefetch=1,
            grid=grid,
            in_specs=[block] * nl,
            out_specs=pl.BlockSpec((ts, lanes), lambda i, w: (i, 0)),
        ),
        compiler_params=pltpu.CompilerParams(
            dimension_semantics=("parallel",),
            vmem_limit_bytes=vmem_limit),
        cost_estimate=pl.CostEstimate(
            flops=2 * nl * rows * lanes,
            bytes_accessed=(nl + 1) * rows * lanes * itemsize,
            transcendentals=0),
    )(w_norm, *flat_layers)

    return out2d.reshape(B, S, H)


class WeightedLayerPooling:
    """JAX/Pallas port of the PyTorch WeightedLayerPooling module."""

    def __init__(self, num_hidden_layers, layer_start: int = 4,
                 layer_weights=None):
        self.layer_start = layer_start
        self.num_hidden_layers = num_hidden_layers
        n = num_hidden_layers + 1 - layer_start
        # torch default init: ones, float32 (deterministic).
        self.layer_weights = (layer_weights if layer_weights is not None
                              else jnp.ones((n,), dtype=jnp.float32))

    def __call__(self, features):
        ft_all_layers = features['all_layer_embeddings']
        # Python-list slice only — no stacked/sliced HBM copy is materialized.
        used_layers = ft_all_layers[self.layer_start:]
        weighted_average = weighted_layer_pooling(used_layers,
                                                  self.layer_weights)
        features.update({'token_embeddings': weighted_average})
        return features


if __name__ == "__main__":
    key = jax.random.PRNGKey(0)

    num_hidden_layers = 12
    layer_start = 4
    B, S, H = 2, 8, 32

    # Build the list of per-layer embeddings (num_hidden_layers + 1 tensors).
    keys = jax.random.split(key, num_hidden_layers + 1)
    all_layers = [jax.random.normal(k, (B, S, H), dtype=jnp.float32)
                  for k in keys]
    features = {'all_layer_embeddings': all_layers}

    # Deterministic, slightly non-uniform weights to exercise the kernel.
    n_used = num_hidden_layers + 1 - layer_start
    layer_weights = 1.0 + 0.1 * jnp.arange(n_used, dtype=jnp.float32)

    module = WeightedLayerPooling(num_hidden_layers, layer_start, layer_weights)
    out_features = module(features)
    tok = out_features['token_embeddings']
    jax.block_until_ready(tok)

    # Pure-JAX reference check (mirrors the PyTorch forward).
    stacked = jnp.stack(all_layers)[layer_start:]
    ref = jnp.sum(stacked * layer_weights[:, None, None, None], axis=0) \
          / jnp.sum(layer_weights)
    assert tok.shape == (B, S, H)
    assert jnp.allclose(tok, ref, atol=1e-5, rtol=1e-5)

    print("KERNEL_OK")
</pallas_src>

<mosaic_0001>
module attributes {stable_mosaic.version = 11 : i64} {
  func.func @kernel(%arg0: i32, %arg1: memref<9xf32, #tpu.memory_space<smem>>, %arg2: memref<4x128xf32, #tpu.memory_space<vmem>>, %arg3: memref<4x128xf32, #tpu.memory_space<vmem>>, %arg4: memref<4x128xf32, #tpu.memory_space<vmem>>, %arg5: memref<4x128xf32, #tpu.memory_space<vmem>>, %arg6: memref<4x128xf32, #tpu.memory_space<vmem>>, %arg7: memref<4x128xf32, #tpu.memory_space<vmem>>, %arg8: memref<4x128xf32, #tpu.memory_space<vmem>>, %arg9: memref<4x128xf32, #tpu.memory_space<vmem>>, %arg10: memref<4x128xf32, #tpu.memory_space<vmem>>, %arg11: memref<4x128xf32, #tpu.memory_space<vmem>>) attributes {dimension_semantics = [#tpu.dimension_semantics<parallel>], iteration_bounds = array<i64: 1>, scalar_prefetch = 1 : i64, scratch_operands = 0 : i64, tpu.core_type = #tpu.core_type<tc>, window_params = [{transform_indices = @transform_0, window_bounds = array<i64: 4, 128>}, {transform_indices = @transform_1, window_bounds = array<i64: 4, 128>}, {transform_indices = @transform_2, window_bounds = array<i64: 4, 128>}, {transform_indices = @transform_3, window_bounds = array<i64: 4, 128>}, {transform_indices = @transform_4, window_bounds = array<i64: 4, 128>}, {transform_indices = @transform_5, window_bounds = array<i64: 4, 128>}, {transform_indices = @transform_6, window_bounds = array<i64: 4, 128>}, {transform_indices = @transform_7, window_bounds = array<i64: 4, 128>}, {transform_indices = @transform_8, window_bounds = array<i64: 4, 128>}, {transform_indices = @transform_9, window_bounds = array<i64: 4, 128>}]} {
    %c0 = arith.constant 0 : index
    %c0_0 = arith.constant 0 : index
    %0 = vector.load %arg2[%c0, %c0_0] : memref<4x128xf32, #tpu.memory_space<vmem>>, vector<4x128xf32>
    %c0_1 = arith.constant 0 : index
    %1 = memref.load %arg1[%c0_1] : memref<9xf32, #tpu.memory_space<smem>>
    %2 = vector.broadcast %1 : f32 to vector<4x128xf32>
    %3 = arith.mulf %0, %2 : vector<4x128xf32>
    %c0_2 = arith.constant 0 : index
    %c0_3 = arith.constant 0 : index
    %4 = vector.load %arg3[%c0_2, %c0_3] : memref<4x128xf32, #tpu.memory_space<vmem>>, vector<4x128xf32>
    %c1 = arith.constant 1 : index
    %5 = memref.load %arg1[%c1] : memref<9xf32, #tpu.memory_space<smem>>
    %6 = vector.broadcast %5 : f32 to vector<4x128xf32>
    %7 = arith.mulf %4, %6 : vector<4x128xf32>
    %8 = arith.addf %3, %7 : vector<4x128xf32>
    %c0_4 = arith.constant 0 : index
    %c0_5 = arith.constant 0 : index
    %9 = vector.load %arg4[%c0_4, %c0_5] : memref<4x128xf32, #tpu.memory_space<vmem>>, vector<4x128xf32>
    %c2 = arith.constant 2 : index
    %10 = memref.load %arg1[%c2] : memref<9xf32, #tpu.memory_space<smem>>
    %11 = vector.broadcast %10 : f32 to vector<4x128xf32>
    %12 = arith.mulf %9, %11 : vector<4x128xf32>
    %13 = arith.addf %8, %12 : vector<4x128xf32>
    %c0_6 = arith.constant 0 : index
    %c0_7 = arith.constant 0 : index
    %14 = vector.load %arg5[%c0_6, %c0_7] : memref<4x128xf32, #tpu.memory_space<vmem>>, vector<4x128xf32>
    %c3 = arith.constant 3 : index
    %15 = memref.load %arg1[%c3] : memref<9xf32, #tpu.memory_space<smem>>
    %16 = vector.broadcast %15 : f32 to vector<4x128xf32>
    %17 = arith.mulf %14, %16 : vector<4x128xf32>
    %18 = arith.addf %13, %17 : vector<4x128xf32>
    %c0_8 = arith.constant 0 : index
    %c0_9 = arith.constant 0 : index
    %19 = vector.load %arg6[%c0_8, %c0_9] : memref<4x128xf32, #tpu.memory_space<vmem>>, vector<4x128xf32>
    %c4 = arith.constant 4 : index
    %20 = memref.load %arg1[%c4] : memref<9xf32, #tpu.memory_space<smem>>
    %21 = vector.broadcast %20 : f32 to vector<4x128xf32>
    %22 = arith.mulf %19, %21 : vector<4x128xf32>
    %23 = arith.addf %18, %22 : vector<4x128xf32>
    %c0_10 = arith.constant 0 : index
    %c0_11 = arith.constant 0 : index
    %24 = vector.load %arg7[%c0_10, %c0_11] : memref<4x128xf32, #tpu.memory_space<vmem>>, vector<4x128xf32>
    %c5 = arith.constant 5 : index
    %25 = memref.load %arg1[%c5] : memref<9xf32, #tpu.memory_space<smem>>
    %26 = vector.broadcast %25 : f32 to vector<4x128xf32>
    %27 = arith.mulf %24, %26 : vector<4x128xf32>
    %28 = arith.addf %23, %27 : vector<4x128xf32>
    %c0_12 = arith.constant 0 : index
    %c0_13 = arith.constant 0 : index
    %29 = vector.load %arg8[%c0_12, %c0_13] : memref<4x128xf32, #tpu.memory_space<vmem>>, vector<4x128xf32>
    %c6 = arith.constant 6 : index
    %30 = memref.load %arg1[%c6] : memref<9xf32, #tpu.memory_space<smem>>
    %31 = vector.broadcast %30 : f32 to vector<4x128xf32>
    %32 = arith.mulf %29, %31 : vector<4x128xf32>
    %33 = arith.addf %28, %32 : vector<4x128xf32>
    %c0_14 = arith.constant 0 : index
    %c0_15 = arith.constant 0 : index
    %34 = vector.load %arg9[%c0_14, %c0_15] : memref<4x128xf32, #tpu.memory_space<vmem>>, vector<4x128xf32>
    %c7 = arith.constant 7 : index
    %35 = memref.load %arg1[%c7] : memref<9xf32, #tpu.memory_space<smem>>
    %36 = vector.broadcast %35 : f32 to vector<4x128xf32>
    %37 = arith.mulf %34, %36 : vector<4x128xf32>
    %38 = arith.addf %33, %37 : vector<4x128xf32>
    %c0_16 = arith.constant 0 : index
    %c0_17 = arith.constant 0 : index
    %39 = vector.load %arg10[%c0_16, %c0_17] : memref<4x128xf32, #tpu.memory_space<vmem>>, vector<4x128xf32>
    %c8 = arith.constant 8 : index
    %40 = memref.load %arg1[%c8] : memref<9xf32, #tpu.memory_space<smem>>
    %41 = vector.broadcast %40 : f32 to vector<4x128xf32>
    %42 = arith.mulf %39, %41 : vector<4x128xf32>
    %43 = arith.addf %38, %42 : vector<4x128xf32>
    %c0_18 = arith.constant 0 : index
    %c0_19 = arith.constant 0 : index
    %44 = vector.load %arg11[%c0_18, %c0_19] : memref<4x128xf32, #tpu.memory_space<vmem>>, vector<4x128xf32>
    tpu.vector_store %arg11[%c0_18, %c0_19], %43 {strides = array<i32>} : memref<4x128xf32, #tpu.memory_space<vmem>>, vector<4x128xf32>,
    return
  }
  func.func @transform_0(%arg0: i32, %arg1: memref<9xf32, #tpu.memory_space<smem>>) -> (i32, i32) {
    %c0_i32 = arith.constant 0 : i32
    %c0_i32_0 = arith.constant 0 : i32
    return %arg0, %c0_i32 : i32, i32
  }
  func.func @transform_1(%arg0: i32, %arg1: memref<9xf32, #tpu.memory_space<smem>>) -> (i32, i32) {
    %c0_i32 = arith.constant 0 : i32
    %c0_i32_0 = arith.constant 0 : i32
    return %arg0, %c0_i32 : i32, i32
  }
  func.func @transform_2(%arg0: i32, %arg1: memref<9xf32, #tpu.memory_space<smem>>) -> (i32, i32) {
    %c0_i32 = arith.constant 0 : i32
    %c0_i32_0 = arith.constant 0 : i32
    return %arg0, %c0_i32 : i32, i32
  }
  func.func @transform_3(%arg0: i32, %arg1: memref<9xf32, #tpu.memory_space<smem>>) -> (i32, i32) {
    %c0_i32 = arith.constant 0 : i32
    %c0_i32_0 = arith.constant 0 : i32
    return %arg0, %c0_i32 : i32, i32
  }
  func.func @transform_4(%arg0: i32, %arg1: memref<9xf32, #tpu.memory_space<smem>>) -> (i32, i32) {
    %c0_i32 = arith.constant 0 : i32
    %c0_i32_0 = arith.constant 0 : i32
    return %arg0, %c0_i32 : i32, i32
  }
  func.func @transform_5(%arg0: i32, %arg1: memref<9xf32, #tpu.memory_space<smem>>) -> (i32, i32) {
    %c0_i32 = arith.constant 0 : i32
    %c0_i32_0 = arith.constant 0 : i32
    return %arg0, %c0_i32 : i32, i32
  }
  func.func @transform_6(%arg0: i32, %arg1: memref<9xf32, #tpu.memory_space<smem>>) -> (i32, i32) {
    %c0_i32 = arith.constant 0 : i32
    %c0_i32_0 = arith.constant 0 : i32
    return %arg0, %c0_i32 : i32, i32
  }
  func.func @transform_7(%arg0: i32, %arg1: memref<9xf32, #tpu.memory_space<smem>>) -> (i32, i32) {
    %c0_i32 = arith.constant 0 : i32
    %c0_i32_0 = arith.constant 0 : i32
    return %arg0, %c0_i32 : i32, i32
  }
  func.func @transform_8(%arg0: i32, %arg1: memref<9xf32, #tpu.memory_space<smem>>) -> (i32, i32) {
    %c0_i32 = arith.constant 0 : i32
    %c0_i32_0 = arith.constant 0 : i32
    return %arg0, %c0_i32 : i32, i32
  }
  func.func @transform_9(%arg0: i32, %arg1: memref<9xf32, #tpu.memory_space<smem>>) -> (i32, i32) {
    %c0_i32 = arith.constant 0 : i32
    %c0_i32_0 = arith.constant 0 : i32
    return %arg0, %c0_i32 : i32, i32
  }
}

</mosaic_0001>

<bundles_post_ra>
// kernel: tpu_custom_call.1
= control target key start
LH: loop header
LB: loop body
LE: loop exit
PB: predicated region body
PF: predicated region fallthrough
CT: control target
= control target key end

     0   :  { %s311_s13 = smov [#allocation3]   ;;  %s406_s0 = inlined_call_operand.hbm [shape: f32[9], index: 0, kind: input, shape index: {}]   ;;  %s407_s1 = inlined_call_operand.hbm [shape: f32[4,128], index: 1, kind: input, shape index: {}]   ;;  %s408_s2 = inlined_call_operand.hbm [shape: f32[4,128], index: 2, kind: input, shape index: {}]   ;;  %s409_s3 = inlined_call_operand.vmem [shape: f32[4,128], index: 3, kind: input, shape index: {}]   ;;  %s410_s4 = inlined_call_operand.hbm [shape: f32[4,128], index: 4, kind: input, shape index: {}]   ;;  %s411_s5 = inlined_call_operand.vmem [shape: f32[4,128], index: 5, kind: input, shape index: {}]   ;;  %s412_s6 = inlined_call_operand.hbm [shape: f32[4,128], index: 6, kind: input, shape index: {}]   ;;  %s413_s7 = inlined_call_operand.vmem [shape: f32[4,128], index: 7, kind: input, shape index: {}]   ;;  %s414_s8 = inlined_call_operand.hbm [shape: f32[4,128], index: 8, kind: input, shape index: {}]   ;;  %s415_s9 = inlined_call_operand.vmem [shape: f32[4,128], index: 9, kind: input, shape index: {}]   ;;  %s416_s10 = inlined_call_operand.hbm [shape: f32[4,128], index: 10, kind: output, shape index: {}]  }
   0x1   :  { %16 = dma.hbm_to_smem %s406_s0, 16, %s311_s13, [#allocation2] }
   0x2   :  { %301 = dma.done.wait [#allocation2], 16 }
   0x3   :  { %302 = vsyncadd [#allocation2], 4294967280 }
   0x4   :  { %18 = sfence }
   0x5   :  { %19 = vsyncpa [#allocation5], 0 }
   0x6   :  { %20 = vsyncpa [#allocation8], 0 }
   0x7   :  { %21 = vsyncpa [#allocation11], 0 }
   0x8   :  { %22 = vsyncpa [#allocation6], 0  ;;  %s312_s16 = smov [#allocation7]   ;;  %s313_s18 = smov [#allocation10]  }
   0x9   :  { %s39_s17 = sshll.u32 %s312_s16, 4  ;;  %s63_s19 = sshll.u32 %s313_s18, 4  ;;  %s40_s17 = int_to_ptr.vmem [resolvable:$true] %s39_s17  ;;  %s64_s19 = int_to_ptr.vmem [resolvable:$true] %s63_s19 }
   0xa   :  { %s189_s20 = scalar_lea.vmem %s40_s17, 64  ;;  %p194_p1 = scmp.lt.s32.totalorder %s40_s17, %s40_s17 }
   0xb   :  { %p190_p0 = scmp.ne.s32.totalorder %s40_s17, %s189_s20  ;;  %p195_p2 = scmp.lt.s32.totalorder %s189_s20, %s189_s20 }
   0xd   :  { %p196_p3 = por %p195_p2, %p194_p1 }
   0xf   :  { %p197_p4 = pnand %p196_p3, %p190_p0 }
  0x11   :  { %200 = shalt.err (!%p197_p4)
}
  0x12   :  { %42 = dma.hbm_to_vmem [thread:$0]  %s408_s2, 64, %s40_s17, [#allocation8]  }
  0x13   :  { %s209_s22 = scalar_lea.vmem %s64_s19, 64  ;;  %p214_p6 = scmp.lt.s32.totalorder %s64_s19, %s64_s19 }
  0x14   :  { %p210_p5 = scmp.ne.s32.totalorder %s64_s19, %s209_s22  ;;  %p215_p7 = scmp.lt.s32.totalorder %s209_s22, %s209_s22 }
  0x16   :  { %p216_p8 = por %p215_p7, %p214_p6 }
  0x18   :  { %p217_p9 = pnand %p216_p8, %p210_p5 }
  0x1a   :  { %220 = shalt.err (!%p217_p9)
}
  0x1b   :  { %66 = dma.hbm_to_vmem [thread:$0]  %s412_s6, 64, %s64_s19, [#allocation11]  }
  0x1c   :  { %s314_s25 = smov [#allocation4]   ;;  %s315_s27 = smov [#allocation9]  }
  0x1d   :  { %s29_s26 = sshll.u32 %s314_s25, 4  ;;  %s51_s28 = sshll.u32 %s315_s27, 4  ;;  %s30_s26 = int_to_ptr.vmem [resolvable:$true] %s29_s26  ;;  %s52_s28 = int_to_ptr.vmem [resolvable:$true] %s51_s28 }
  0x1e   :  { %s229_s29 = scalar_lea.vmem %s30_s26, 64  ;;  %p234_p11 = scmp.lt.s32.totalorder %s30_s26, %s30_s26 }
  0x1f   :  { %p230_p10 = scmp.ne.s32.totalorder %s30_s26, %s229_s29  ;;  %p235_p12 = scmp.lt.s32.totalorder %s229_s29, %s229_s29 }
  0x21   :  { %p236_p13 = por %p235_p12, %p234_p11 }
  0x23   :  { %p237_p0 = pnand %p236_p13, %p230_p10 }
  0x25   :  { %240 = shalt.err (!%p237_p0)
}
  0x26   :  { %32 = dma.hbm_to_vmem [thread:$0]  %s407_s1, 64, %s30_s26, [#allocation5]  }
  0x27   :  { %s249_s11 = scalar_lea.vmem %s52_s28, 64  ;;  %p254_p2 = scmp.lt.s32.totalorder %s52_s28, %s52_s28 }
  0x28   :  { %p250_p1 = scmp.ne.s32.totalorder %s52_s28, %s249_s11  ;;  %p255_p3 = scmp.lt.s32.totalorder %s249_s11, %s249_s11 }
  0x2a   :  { %p256_p4 = por %p255_p3, %p254_p2 }
  0x2c   :  { %p257_p5 = pnand %p256_p4, %p250_p1 }
  0x2e   :  { %260 = shalt.err (!%p257_p5)
}
  0x2f   :  { %54 = dma.hbm_to_vmem [thread:$0]  %s410_s4, 64, %s52_s28, [#allocation8]  }
  0x30   :  { %s316_s13 = smov [#allocation12]  }
  0x31   :  { %s75_s14 = sshll.u32 %s316_s13, 4  ;;  %s76_s14 = int_to_ptr.vmem [resolvable:$true] %s75_s14 }
  0x32   :  { %s269_s15 = scalar_lea.vmem %s76_s14, 64  ;;  %p274_p7 = scmp.lt.s32.totalorder %s76_s14, %s76_s14 }
  0x33   :  { %p270_p6 = scmp.ne.s32.totalorder %s76_s14, %s269_s15  ;;  %p275_p8 = scmp.lt.s32.totalorder %s269_s15, %s269_s15 }
  0x35   :  { %p276_p9 = por %p275_p8, %p274_p7 }
  0x37   :  { %p277_p10 = pnand %p276_p9, %p270_p6 }
  0x39   :  { %280 = shalt.err (!%p277_p10)
}
  0x3a   :  { %78 = dma.hbm_to_vmem [thread:$0]  %s414_s8, 64, %s76_s14, [#allocation11]  }
  0x3b   :  { %303 = dma.done.wait [#allocation5], 64  }
  0x3c   :  { %304 = vsyncadd [#allocation5], 4294967232 }
  0x3d   :  { %305 = dma.done.wait [#allocation8], 128  }
  0x3e   :  { %306 = vsyncadd [#allocation8], 4294967168 }
  0x3f   :  { %307 = dma.done.wait [#allocation11], 128  }
  0x40   :  { %308 = vsyncadd [#allocation11], 4294967168  ;;  %s97_s4 = sld [smem:[#allocation3]]  ;;  %v96_v0 = vld [vmem:[#allocation4] sm:$0xf]  ;;  %s317_s29 = smov [#allocation13]  }
  0x41   :  { %s158_s17 = sld [smem:[#allocation3 + $0x1]]  ;;  %v100_v2 = vld [vmem:[#allocation7] sm:$0xf]  ;;  %v105_v3 = vld [vmem:[%s409_s3] sm:$0xf]  ;;  %s147_s2 = sshll.u32 %s317_s29, 4  ;;  %s148_s2 = int_to_ptr.vmem [resolvable:$true] %s147_s2 }
  0x42   :  { %s159_s18 = sld [smem:[#allocation3 + $0x2]]  ;;  %v110_v6 = vld [vmem:[#allocation9] sm:$0xf]  ;;  %v115_v11 = vld [vmem:[%s411_s5] sm:$0xf]  ;;  %p286_p12 = scmp.lt.s32.totalorder %s148_s2, %s148_s2 }
  0x43   :  { %s160_s19 = sld [smem:[#allocation3 + $0x3]]  ;;  %v120_v15 = vld [vmem:[#allocation10] sm:$0xf]  ;;  %v125_v19 = vld [vmem:[%s413_s7] sm:$0xf]  ;;  %s281_s7 = scalar_lea.vmem %s148_s2, 64 }
  0x44   :  { %s161_s20 = sld [smem:[#allocation3 + $0x4]]  ;;  %v130_v23 = vld [vmem:[#allocation12] sm:$0xf]  ;;  %p282_p11 = scmp.ne.s32.totalorder %s148_s2, %s281_s7 }
  0x45   :  { %s162_s0 = sld [smem:[#allocation3 + $0x5]]  ;;  %v135_v27 = vld [vmem:[%s415_s9] sm:$0xf]  ;;  %p287_p13 = scmp.lt.s32.totalorder %s281_s7, %s281_s7 }
  0x46   :  { %v98_v1 = vstv %s97_s4  ;;  %s163_s8 = sld [smem:[#allocation3 + $0x6]] }
  0x47   :  { %v99_v4 = vmul.f32 %v98_v1, %v96_v0  ;;  %v102_v5 = vstv %s158_s17  ;;  %s164_s25 = sld [smem:[#allocation3 + $0x7]]  ;;  %p288_p0 = por %p287_p13, %p286_p12 }
  0x48   :  { %v103_v7 = vmul.f32 %v102_v5, %v100_v2  ;;  %v107_v8 = vstv %s159_s18  ;;  %s165_s26 = sld [smem:[#allocation3 + $0x8]] }
  0x49   :  { %v108_v9 = vmul.f32 %v107_v8, %v105_v3  ;;  %v112_v10 = vstv %s160_s19  ;;  %p289_p1 = pnand %p288_p0, %p282_p11 }
  0x4a   :  { %v104_v12 = vadd.f32 %v103_v7, %v99_v4  ;;  %v113_v13 = vmul.f32 %v112_v10, %v110_v6  ;;  %v117_v14 = vstv %s161_s20 }
  0x4b   :  { %v122_v16 = vstv %s162_s0  ;;  %v118_v18 = vmul.f32 %v117_v14, %v115_v11 }
  0x4c   :  { %v109_v17 = vadd.f32 %v108_v9, %v104_v12  ;;  %v123_v21 = vmul.f32 %v122_v16, %v120_v15  ;;  %v127_v22 = vstv %s163_s8 }
  0x4d   :  { %v132_v24 = vstv %s164_s25  ;;  %v128_v26 = vmul.f32 %v127_v22, %v125_v19 }
  0x4e   :  { %v114_v20 = vadd.f32 %v113_v13, %v109_v17  ;;  %v137_v28 = vstv %s165_s26  ;;  %v133_v30 = vmul.f32 %v132_v24, %v130_v23 }
  0x4f   :  { %v138_v32 = vmul.f32 %v137_v28, %v135_v27 }
  0x50   :  { %v119_v25 = vadd.f32 %v118_v18, %v114_v20 }
  0x52   :  { %v124_v29 = vadd.f32 %v123_v21, %v119_v25 }
  0x54   :  { %v129_v31 = vadd.f32 %v128_v26, %v124_v29 }
  0x56   :  { %v134_v33 = vadd.f32 %v133_v30, %v129_v31 }
  0x58   :  { %v139_v34 = vadd.f32 %v138_v32, %v134_v33 }
  0x5a   :  { %140 = vst [vmem:[#allocation13] sm:$0xf] %v139_v34 }
  0x5b   :  { %292 = shalt.err (!%p289_p1)
}
  0x5c   :  { %150 = dma.vmem_to_hbm [thread:$0]  %s148_s2, 64, %s416_s10, [#allocation6]  }
  0x5d   :  { %309 = dma.done.wait [#allocation6], 64  }
  0x5e   :  { %310 = vsyncadd [#allocation6], 4294967232 }
  0x5f   :  { %154 = vsyncpa [#allocation5], 1 }
  0x60   :  { %155 = vsyncpa [#allocation8], 1 }
  0x61   :  { %156 = vsyncpa [#allocation11], 1 }
  0x62   :  { %157 = vsyncpa [#allocation6], 1 }

</bundles_post_ra>
